<compile_context>
chip_gen: v6e
topology: v6e:2x2x1
jax: 0.10.0
libtpu: 0.0.40
codegen_flags: <defaults>
</compile_context>

<pallas_src>
import jax
import jax.numpy as jnp
from jax.experimental import pallas as pl
from jax.experimental.pallas import tpu as pltpu


def _linear_sigmoid_kernel(w_ref, b_ref, xT_ref, o_ref):
    # w_ref: (OUT, IN)  b_ref: (OUT, 1)  xT_ref: (IN, TB)  o_ref: (OUT, TB)
    xT = xT_ref[...]
    w = w_ref[...]
    in_f = xT_ref.shape[0]

    z = b_ref[...]                                   # (OUT, 1), broadcasts over lanes
    for k in range(in_f):                            # unrolled at trace time (IN == 3)
        z = z + w[:, k:k + 1] * xT[k:k + 1, :]       # VPU FMA: (OUT,1)x(1,TB)->(OUT,TB)

    # sigmoid(z) == 0.5 * tanh(0.5 * z) + 0.5  -> EUP tanh, no VPU divide.
    o_ref[...] = (0.5 * jnp.tanh(0.5 * z) + 0.5).astype(o_ref.dtype)


def my_model_forward(x, weight, bias, *, block_b=1024, min_pallas_batch=1024):
    """x: (B, 3) f32, weight: (4, 3) f32, bias: (4,) f32 -> (B, 4) f32."""
    B, in_f = x.shape
    out_f, in_f_w = weight.shape
    assert in_f == in_f_w
    assert block_b % 128 == 0, "batch tile must be a multiple of 128 lanes"

    # Tiny batches: pallas_call fixed cost dominates; let XLA fuse it.
    if B < min_pallas_batch:
        return jax.nn.sigmoid(x @ weight.T + bias)

    tb = block_b
    num_tiles = pl.cdiv(B, tb)
    b_pad = num_tiles * tb

    xT = x.T                                         # (IN, B): lane-dense layout
    if b_pad != B:
        xT = jnp.pad(xT, ((0, 0), (0, b_pad - B)))   # pad columns; sliced off below
    b2 = bias.reshape(out_f, 1)

    oT = pl.pallas_call(
        _linear_sigmoid_kernel,
        out_shape=jax.ShapeDtypeStruct((out_f, b_pad), jnp.float32),
        grid_spec=pltpu.PrefetchScalarGridSpec(
            num_scalar_prefetch=0,
            grid=(num_tiles,),
            in_specs=[
                # weight / bias: constant index_map -> stay resident in VMEM,
                # DMA'd only once (block shapes equal full array dims -> legal).
                pl.BlockSpec((out_f, in_f), lambda i: (0, 0)),
                pl.BlockSpec((out_f, 1), lambda i: (0, 0)),
                # x^T: tiled along the lane (batch) axis, double-buffered.
                pl.BlockSpec((in_f, tb), lambda i: (0, i)),
            ],
            out_specs=pl.BlockSpec((out_f, tb), lambda i: (0, i)),
        ),
        compiler_params=pltpu.CompilerParams(
            # Batch tiles are independent -> shard across v7x's 2 TensorCores.
            dimension_semantics=("parallel",),
        ),
    )(weight, b2, xT)

    return oT[:, :B].T


if __name__ == "__main__":
    key = jax.random.PRNGKey(0)
    k_x1, k_x2, k_x3, k_w, k_b = jax.random.split(key, 5)

    in_features, out_features = 3, 4

    # Deterministic init mimicking torch.nn.Linear: U(-1/sqrt(fan_in), 1/sqrt(fan_in))
    bound = 1.0 / jnp.sqrt(jnp.float32(in_features))
    weight = jax.random.uniform(
        k_w, (out_features, in_features), jnp.float32, -bound, bound
    )
    bias = jax.random.uniform(k_b, (out_features,), jnp.float32, -bound, bound)

    def reference(x):
        return jax.nn.sigmoid(x @ weight.T + bias)

    # 1) Small batch (B=8): gated to the plain-XLA fast path.
    x_small = jax.random.normal(k_x1, (8, in_features), jnp.float32)
    out_small = jax.block_until_ready(my_model_forward(x_small, weight, bias))
    assert out_small.shape == (8, out_features)
    assert jnp.allclose(out_small, reference(x_small), atol=1e-5, rtol=1e-5)

    # 2) Pallas path: batch big enough to tile (4 grid steps of 512 lanes).
    x_big = jax.random.normal(k_x2, (2048, in_features), jnp.float32)
    out_big = jax.block_until_ready(
        my_model_forward(x_big, weight, bias, block_b=512)
    )
    assert out_big.shape == (2048, out_features)
    assert jnp.allclose(out_big, reference(x_big), atol=1e-5, rtol=1e-5)

    # 3) Pallas path with a ragged batch (exercises the pad + slice logic).
    x_ragged = jax.random.normal(k_x3, (777, in_features), jnp.float32)
    out_ragged = jax.block_until_ready(
        my_model_forward(x_ragged, weight, bias, block_b=256, min_pallas_batch=0)
    )
    assert out_ragged.shape == (777, out_features)
    assert jnp.allclose(out_ragged, reference(x_ragged), atol=1e-5, rtol=1e-5)

    print("KERNEL_OK")
</pallas_src>

<mosaic_0001>
module attributes {stable_mosaic.version = 11 : i64} {
  func.func @_linear_sigmoid_kernel(%arg0: i32, %arg1: memref<4x3xf32, #tpu.memory_space<vmem>>, %arg2: memref<4x1xf32, #tpu.memory_space<vmem>>, %arg3: memref<3x512xf32, #tpu.memory_space<vmem>>, %arg4: memref<4x512xf32, #tpu.memory_space<vmem>>) attributes {dimension_semantics = [#tpu.dimension_semantics<parallel>], iteration_bounds = array<i64: 4>, scalar_prefetch = 0 : i64, scratch_operands = 0 : i64, tpu.core_type = #tpu.core_type<tc>, window_params = [{pipeline_mode = #tpu.pipeline_mode<synchronous>, transform_indices = @transform_0, window_bounds = array<i64: 4, 3>}, {pipeline_mode = #tpu.pipeline_mode<synchronous>, transform_indices = @transform_1, window_bounds = array<i64: 4, 1>}, {transform_indices = @transform_2, window_bounds = array<i64: 3, 512>}, {transform_indices = @transform_3, window_bounds = array<i64: 4, 512>}]} {
    %c0 = arith.constant 0 : index
    %c0_0 = arith.constant 0 : index
    %0 = vector.load %arg3[%c0, %c0_0] : memref<3x512xf32, #tpu.memory_space<vmem>>, vector<3x512xf32>
    %c0_1 = arith.constant 0 : index
    %c0_2 = arith.constant 0 : index
    %1 = vector.load %arg1[%c0_1, %c0_2] : memref<4x3xf32, #tpu.memory_space<vmem>>, vector<4x3xf32>
    %c0_3 = arith.constant 0 : index
    %c0_4 = arith.constant 0 : index
    %2 = vector.load %arg2[%c0_3, %c0_4] : memref<4x1xf32, #tpu.memory_space<vmem>>, vector<4x1xf32>
    %3 = vector.extract_strided_slice %1 {offsets = [0, 0], sizes = [4, 1], strides = [1, 1]} : vector<4x3xf32> to vector<4x1xf32>
    %4 = vector.extract_strided_slice %0 {offsets = [0, 0], sizes = [1, 512], strides = [1, 1]} : vector<3x512xf32> to vector<1x512xf32>
    %5 = vector.broadcast %3 : vector<4x1xf32> to vector<4x512xf32>
    %6 = vector.broadcast %4 : vector<1x512xf32> to vector<4x512xf32>
    %7 = arith.mulf %5, %6 : vector<4x512xf32>
    %8 = vector.broadcast %2 : vector<4x1xf32> to vector<4x512xf32>
    %9 = arith.addf %8, %7 : vector<4x512xf32>
    %10 = vector.extract_strided_slice %1 {offsets = [0, 1], sizes = [4, 1], strides = [1, 1]} : vector<4x3xf32> to vector<4x1xf32>
    %11 = vector.extract_strided_slice %0 {offsets = [1, 0], sizes = [1, 512], strides = [1, 1]} : vector<3x512xf32> to vector<1x512xf32>
    %12 = vector.broadcast %10 : vector<4x1xf32> to vector<4x512xf32>
    %13 = vector.broadcast %11 : vector<1x512xf32> to vector<4x512xf32>
    %14 = arith.mulf %12, %13 : vector<4x512xf32>
    %15 = arith.addf %9, %14 : vector<4x512xf32>
    %16 = vector.extract_strided_slice %1 {offsets = [0, 2], sizes = [4, 1], strides = [1, 1]} : vector<4x3xf32> to vector<4x1xf32>
    %17 = vector.extract_strided_slice %0 {offsets = [2, 0], sizes = [1, 512], strides = [1, 1]} : vector<3x512xf32> to vector<1x512xf32>
    %18 = vector.broadcast %16 : vector<4x1xf32> to vector<4x512xf32>
    %19 = vector.broadcast %17 : vector<1x512xf32> to vector<4x512xf32>
    %20 = arith.mulf %18, %19 : vector<4x512xf32>
    %21 = arith.addf %15, %20 : vector<4x512xf32>
    %cst = arith.constant 5.000000e-01 : f32
    %22 = vector.broadcast %cst : f32 to vector<4x512xf32>
    %23 = arith.mulf %22, %21 : vector<4x512xf32>
    %24 = math.tanh %23 : vector<4x512xf32>
    %cst_5 = arith.constant 5.000000e-01 : f32
    %25 = vector.broadcast %cst_5 : f32 to vector<4x512xf32>
    %26 = arith.mulf %25, %24 : vector<4x512xf32>
    %cst_6 = arith.constant 5.000000e-01 : f32
    %27 = vector.broadcast %cst_6 : f32 to vector<4x512xf32>
    %28 = arith.addf %26, %27 : vector<4x512xf32>
    %c0_7 = arith.constant 0 : index
    %c0_8 = arith.constant 0 : index
    %29 = vector.load %arg4[%c0_7, %c0_8] : memref<4x512xf32, #tpu.memory_space<vmem>>, vector<4x512xf32>
    tpu.vector_store %arg4[%c0_7, %c0_8], %28 {strides = array<i32>} : memref<4x512xf32, #tpu.memory_space<vmem>>, vector<4x512xf32>,
    return
  }
  func.func @transform_0(%arg0: i32) -> (i32, i32) {
    %c0_i32 = arith.constant 0 : i32
    %c0_i32_0 = arith.constant 0 : i32
    %c0_i32_1 = arith.constant 0 : i32
    return %c0_i32, %c0_i32_0 : i32, i32
  }
  func.func @transform_1(%arg0: i32) -> (i32, i32) {
    %c0_i32 = arith.constant 0 : i32
    %c0_i32_0 = arith.constant 0 : i32
    %c0_i32_1 = arith.constant 0 : i32
    return %c0_i32, %c0_i32_0 : i32, i32
  }
  func.func @transform_2(%arg0: i32) -> (i32, i32) {
    %c0_i32 = arith.constant 0 : i32
    %c0_i32_0 = arith.constant 0 : i32
    return %c0_i32, %arg0 : i32, i32
  }
  func.func @transform_3(%arg0: i32) -> (i32, i32) {
    %c0_i32 = arith.constant 0 : i32
    %c0_i32_0 = arith.constant 0 : i32
    return %c0_i32, %arg0 : i32, i32
  }
}

</mosaic_0001>

<bundles_post_ra>
// kernel: tpu_custom_call.1
= control target key start
LH: loop header
LB: loop body
LE: loop exit
PB: predicated region body
PF: predicated region fallthrough
CT: control target
= control target key end

     0   :  { %8 = vsyncpa [#allocation3], 0  ;;  %s801_s0 = inlined_call_operand.vmem [shape: f32[4,3], index: 0, kind: input, shape index: {}]   ;;  %s802_s1 = inlined_call_operand.vmem [shape: f32[4,1], index: 1, kind: input, shape index: {}]   ;;  %s803_s2 = inlined_call_operand.hbm [shape: f32[3,2048], index: 2, kind: input, shape index: {}]   ;;  %s804_s3 = inlined_call_operand.hbm [shape: f32[4,2048], index: 3, kind: output, shape index: {}]  }
   0x1   :  { %10 = vsyncpa [#allocation3 + $0x1], 0 }
   0x2   :  { %11 = vsyncpa [#allocation4], 0 }
   0x3   :  { %13 = vsyncpa [#allocation4 + $0x1], 0  ;;  %s652_s12 = smov 0   ;;  %s654_s13 = smov 0  }
   0x4   :  { %s656_s14 = smov 0   ;;  %s658_s15 = smov 0  }
   0x5 LB: > { %s673_s16 = sadd.s32 4294967295, %s625_s15   ;;  %s456_s17 = sadd.s32 4294967294, %s625_s15   ;;  %s625_s15 = sphi %s658_s15, %s820_s15   ;;  %s621_s14 = sphi %s656_s14, %s819_s14   ;;  %s617_s13 = sphi %s654_s13, %s818_s13   ;;  %s613_s12 = sphi %s652_s12, %s817_s12  }
   0x6   : > { %s677_s18 = sadd.s32 1, %s625_s15   ;;  %s68_s19 = sadd.s32 1, %s621_s14 }
   0x7   : > { %s65_s20 = ssub.s32 %s625_s15, %s677_s18  ;;  %p75_p0 = scmp.ne.s32.totalorder %s621_s14, %s617_s13 }
   0x8   : > { %p66_p1 = scmp.eq.s32.totalorder %s65_s20, 0  ;;  %p76_p2 = scmp.eq.s32.totalorder %s625_s15, 0 }
   0x9   : > { %p81_p3 = scmp.ne.s32.totalorder %s617_s13, %s613_s12  ;;  %p82_p4 = scmp.eq.s32.totalorder %s673_s16, 0 }
   0xa   : > { %s689_s21 = scalar_select %p66_p1, %s621_s14, %s68_s19  }
   0xb   : > { %p691_p5 = por %p76_p2, %p75_p0  ;;  %p695_p6 = por %p82_p4, %p81_p3 }
   0xc   : > { %p105_p7 = scmp.eq.s32.totalorder %s673_s16, 3  ;;  %p111_p8 = scmp.eq.s32.totalorder %s456_s17, 3 }
   0xd   : > { %s808_s23 = scalar_select %p695_p6, 1, 0 }
   0xe   : > { %p484_p9 = scmp.lt.s32.totalorder %s625_s15, 4  ;;  %p701_p10 = por %p105_p7, %p75_p0 }
   0xf   : > { %p705_p11 = por %p111_p8, %p81_p3  ;;  %s137_s26 = sand.u32 1, %s621_s14  }
  0x10   : > { %s809_s24 = scalar_select %p701_p10, 1, 0 }
  0x11   : > { %s810_s25 = scalar_select %p705_p11, 1, 0 }
  0x12   : > { %s470_s27 = sshll.u32 %s625_s15, 8  ;;  %s459_s28 = sshll.u32 %s137_s26, 4 }
  0x13   : > { %s714_s4 = scalar_lea.hbm %s803_s2, %s470_s27  ;;  %s141_s5 = scalar_lea.vmem [#allocation2], %s459_s28 }
  0x14   : > { %s149_s6 = sshll.u32 %s141_s5, 4  ;;  %p718_p12 = pnand %p484_p9, %p691_p5  ;;  %s722_s6 = int_to_ptr.vmem [resolvable:$true] %s149_s6 }
  0x15   : > { %s138_s8 = scalar_lea.sflag [#allocation3], %s137_s26  ;;  %s533_s9 = scalar_lea.hbm %s714_s4, 256 }
  0x16   : > { %p534_p1 = scmp.ne.s32.totalorder %s714_s4, %s533_s9  ;;  %p535_p2 = pneg %p718_p12 }
  0x17   : > { %s538_s17 = scalar_lea.hbm %s803_s2, 1024  ;;  %p539_p5 = scmp.lt.s32.totalorder %s714_s4, %s803_s2 }
  0x18   : > { %p536_p3 = pnand %p535_p2, %p534_p1  ;;  %p540_p7 = scmp.lt.s32.totalorder %s538_s17, %s533_s9 }
  0x1a   : > { %p537_p4 = pneg %p536_p3  ;;  %p541_p8 = por %p540_p7, %p539_p5 }
  0x1c   : > { %p542_p9 = pnand %p541_p8, %p537_p4 }
  0x1e   : > { %545 = shalt.err (!%p542_p9)
}
  0x1f   : > { %s546_s22 = scalar_lea.vmem %s722_s6, 256  ;;  %s627_s26 = smov [#allocation2]  }
  0x20   : > { %p547_p13 = scmp.ne.s32.totalorder %s722_s6, %s546_s22  ;;  %s551_s27 = sshll.u32 %s627_s26, 4  ;;  %s552_s27 = int_to_ptr.vmem [resolvable:$false] %s551_s27 }
  0x21   : > { %s553_s28 = scalar_lea.vmem %s552_s27, 512  ;;  %p554_p3 = scmp.lt.s32.totalorder %s722_s6, %s552_s27 }
  0x22   : > { %p549_p0 = pnand %p547_p13, %p535_p2  ;;  %p555_p11 = scmp.lt.s32.totalorder %s553_s28, %s546_s22 }
  0x24   : > { %p550_p1 = pneg %p549_p0  ;;  %p556_p10 = por %p555_p11, %p554_p3 }
  0x26   : > { %p557_p6 = pnand %p556_p10, %p550_p1 }
  0x28   : > { %560 = shalt.err (!%p557_p6)
}
  0x29   : > { %479 = dma.hbm_to_vmem [thread:$0]  (!%p718_p12), %s714_s4, 256, %s722_s6, %s138_s8  }
  0x2a   : > { %p812_p4 = scmp.lt.s32.totalorder %s625_s15, 5  ;;  %p813_p5 = scmp.ge.s32.totalorder %s625_s15, 1 }
  0x2c   : > { %p155_p13 = pnand %p813_p5, %p812_p4 }
  0x2d   : > { %s749_s29 = sand.u32 (!%p155_p13), 1, %s617_s13   ;;  %p814_p6 = scmp.ne.s32.totalorder (!%p155_p13), %s808_s23, 0 }
  0x2e   : > { %158 = sbr.rel (%p155_p13) target bundleno = 226 (0xe2), region = 32  ;;  %s463_s30 = sshll.u32 (!%p155_p13), %s749_s29, 4 }
  0x2f   : > { %s161_s5 = scalar_lea.sflag (!%p155_p13), [#allocation3], %s749_s29  ;;  %s164_s7 = scalar_lea.vmem (!%p155_p13), [#allocation2], %s463_s30 }
  0x33   : > { %604 = dma.done.wait (%p814_p6), %s161_s5, 256  }
  0x34   : > { %606 = vsyncadd (%p814_p6), %s161_s5, 4294967040  ;;  %v628_v0 = vmov 0   ;;  %v629_v1 = vmov 1   ;;  %v191_v2 = vld [vmem:[%s801_s0] sm:$0xf]  ;;  %v630_v4 = vmov 2   ;;  %v200_v5 = vlaneseq }
  0x35   : > { %521 = vset.pattern.permute.xlu0 %v628_v0  ;;  %522 = vset.pattern.permute.xlu1 %v629_v1  ;;  %v192_v3 = vld [vmem:[%s802_s1] sm:$0xf]  ;;  %v190_v12 = vld [vmem:[%s164_s7 + $0x8] sm:$0x77]  ;;  %s471_s23 = sshll.u32 %s673_s16, 8  ;;  %s186_s10 = scalar_lea.vmem [#allocation5], %s463_s30 }
  0x36   : > { %195 = vperm.xlu0 %521, %v191_v2   ;;  %250 = vperm.xlu1 %522, %v191_v2   ;;  %v201_v6 = vshrl.u32 %v200_v5, 7  ;;  %v189_v11 = vld [vmem:[%s164_s7] sm:$0x77]  ;;  %s386_s11 = sshll.u32 %s186_s10, 4  ;;  %s384_s20 = scalar_lea.hbm %s804_s3, %s471_s23  ;;  %s387_s11 = int_to_ptr.vmem [resolvable:$true] %s386_s11 }
  0x37   : > { %s372_s22 = scalar_lea.sflag [#allocation4], %s749_s29  ;;  %s561_s26 = scalar_lea.vmem %s387_s11, 256 }
  0x38   : > { %v202_v7 = vsub.s32 0, %v201_v6  ;;  %v206_v8 = vsub.s32 4, %v201_v6  ;;  %v255_v9 = vsub.s32 1, %v201_v6  ;;  %v259_v10 = vsub.s32 5, %v201_v6  ;;  %p562_p10 = scmp.ne.s32.totalorder %s387_s11, %s561_s26  ;;  %p815_p11 = scmp.ne.s32.totalorder %s809_s24, 0 }
  0x39   : > { %v303_v13 = vsub.s32 2, %v201_v6  ;;  %v307_v14 = vsub.s32 6, %v201_v6  ;;  %s631_s16 = smov [#allocation5]  }
  0x3a   : > { %242 = vperm.xlu0 %521, %v192_v3   ;;  %523 = vset.pattern.permute.xlu1 %v630_v4  ;;  %v203_v15 = vrot.slane %v189_v11, %v202_v7  ;;  %v207_v16 = vrot.slane %v189_v11, %v206_v8  ;;  %v211_v17 = vrot.slane %v190_v12, %v202_v7  ;;  %p563_p12 = pnand %p562_p10, %p815_p11  ;;  %s565_s27 = sshll.u32 %s631_s16, 4  ;;  %s566_s27 = int_to_ptr.vmem [resolvable:$false] %s565_s27 }
  0x3b   : > { %298 = vperm.xlu1 %523, %v191_v2   ;;  %v215_v18 = vrot.slane %v190_v12, %v206_v8  ;;  %v256_v19 = vrot.slane %v189_v11, %v255_v9  ;;  %v260_v20 = vrot.slane %v189_v11, %v259_v10  ;;  %v264_v21 = vrot.slane %v190_v12, %v255_v9  ;;  %s567_s28 = scalar_lea.vmem %s566_s27, 512  ;;  %p568_p2 = scmp.lt.s32.totalorder %s387_s11, %s566_s27 }
  0x3c   : > { %v268_v22 = vrot.slane %v190_v12, %v259_v10  ;;  %v304_v23 = vrot.slane %v189_v11, %v303_v13  ;;  %v308_v24 = vrot.slane %v189_v11, %v307_v14  ;;  %v312_v25 = vrot.slane %v190_v12, %v303_v13  ;;  %p564_p0 = pneg %p563_p12  ;;  %p569_p7 = scmp.lt.s32.totalorder %s567_s28, %s561_s26 }
  0x3d   : > { %v316_v26 = vrot.slane %v190_v12, %v307_v14  ;;  %v223_v27 = vrot.slane %v203_v15, %v202_v7  ;;  %v227_v28 = vrot.slane %v207_v16, %v202_v7  ;;  %v231_v29 = vrot.slane %v211_v17, %v202_v7 }
  0x3e   : > { %524 = vset.pattern.permute.xlu0 %v630_v4  ;;  %v235_v30 = vrot.slane %v215_v18, %v202_v7  ;;  %v276_v33 = vrot.slane %v256_v19, %v255_v9  ;;  %v280_v34 = vrot.slane %v260_v20, %v255_v9  ;;  %v284_v35 = vrot.slane %v264_v21, %v255_v9  ;;  %p570_p8 = por %p569_p7, %p568_p2 }
  0x3f   : > { %v288_v36 = vrot.slane %v268_v22, %v255_v9  ;;  %v324_v37 = vrot.slane %v304_v23, %v303_v13  ;;  %v328_v38 = vrot.slane %v308_v24, %v303_v13  ;;  %v332_v39 = vrot.slane %v312_v25, %v303_v13 }
  0x40   : > { %v336_v40 = vrot.slane %v316_v26, %v303_v13  ;;  %p571_p9 = pnand %p570_p8, %p564_p0 }
  0xb1   : > { %v196_v31 = vpop.permute.xlu0 %195  ;;  %v251_v32 = vpop.permute.xlu1 %250 }
  0xb2   : > { %v236_v41 = vmul.f32 %v223_v27, %v196_v31  ;;  %v237_v42 = vmul.f32 %v227_v28, %v196_v31  ;;  %v238_v43 = vmul.f32 %v231_v29, %v196_v31  ;;  %v239_v44 = vmul.f32 %v235_v30, %v196_v31 }
  0xb3   : > { %v289_v45 = vmul.f32 %v276_v33, %v251_v32  ;;  %v290_v46 = vmul.f32 %v280_v34, %v251_v32  ;;  %v291_v47 = vmul.f32 %v284_v35, %v251_v32  ;;  %v292_v48 = vmul.f32 %v288_v36, %v251_v32 }
  0xb5   : > { %v243_v49 = vpop.permute.xlu0 %242 }
  0xb6   : > { %v245_v50 = vadd.f32 %v243_v49, %v236_v41  ;;  %v246_v51 = vadd.f32 %v243_v49, %v237_v42  ;;  %v247_v52 = vadd.f32 %v243_v49, %v238_v43  ;;  %v248_v53 = vadd.f32 %v243_v49, %v239_v44  ;;  %v299_v54 = vpop.permute.xlu1 %298 }
  0xb7   : > { %v337_v55 = vmul.f32 %v324_v37, %v299_v54  ;;  %v338_v56 = vmul.f32 %v328_v38, %v299_v54  ;;  %v339_v57 = vmul.f32 %v332_v39, %v299_v54  ;;  %v340_v58 = vmul.f32 %v336_v40, %v299_v54 }
  0xb8   : > { %v293_v59 = vadd.f32 %v289_v45, %v245_v50  ;;  %v294_v60 = vadd.f32 %v290_v46, %v246_v51  ;;  %v295_v61 = vadd.f32 %v291_v47, %v247_v52  ;;  %v296_v62 = vadd.f32 %v292_v48, %v248_v53 }
  0xba   : > { %v341_v63 = vadd.f32 %v337_v55, %v293_v59  ;;  %v342_v0 = vadd.f32 %v338_v56, %v294_v60  ;;  %v343_v1 = vadd.f32 %v339_v57, %v295_v61  ;;  %v344_v2 = vadd.f32 %v340_v58, %v296_v62 }
  0xbc   : > { %v345_v3 = vmul.f32 0.5, %v341_v63  ;;  %v346_v4 = vmul.f32 0.5, %v342_v0  ;;  %v347_v5 = vmul.f32 0.5, %v343_v1  ;;  %v348_v6 = vmul.f32 0.5, %v344_v2 }
  0xbe   : > { %525 = vtanh.f32 %v345_v3 }
  0xbf   : > { %527 = vtanh.f32 %v346_v4 }
  0xc0   : > { %529 = vtanh.f32 %v347_v5 }
  0xc1   : > { %531 = vtanh.f32 %v348_v6 }
  0xcb   : > { %v526_v7 = vpop.eup %525 }
  0xcc   : > { %v528_v8 = vpop.eup %527  ;;  %v353_v9 = vmul.f32 0.5, %v526_v7 }
  0xcd   : > { %v530_v10 = vpop.eup %529  ;;  %v354_v11 = vmul.f32 0.5, %v528_v8 }
  0xce   : > { %v532_v12 = vpop.eup %531  ;;  %v355_v13 = vmul.f32 0.5, %v530_v10  ;;  %v357_v14 = vadd.f32 0.5, %v353_v9 }
  0xcf   : > { %v356_v15 = vmul.f32 0.5, %v532_v12  ;;  %v358_v16 = vadd.f32 0.5, %v354_v11 }
  0xd0   : > { %v359_v17 = vadd.f32 0.5, %v355_v13 }
  0xd1   : > { %v360_v18 = vadd.f32 0.5, %v356_v15  ;;  %v365_v19 = vcombine.low %v357_v14, %v358_v16 }
  0xd3   : > { %v366_v20 = vcombine.low %v359_v17, %v360_v18  ;;  %369 = vst [vmem:[%s186_s10] sm:$0xff] %v365_v19 }
  0xd5   : > { %370 = vst [vmem:[%s186_s10 + $0x8] sm:$0xff] %v366_v20 }
  0xd6   : > { %574 = shalt.err (!%p571_p9)
}
  0xd7   : > { %s575_s30 = scalar_lea.hbm %s384_s20, 256  ;;  %s579_s7 = scalar_lea.hbm %s804_s3, 1024 }
  0xd8   : > { %p576_p1 = scmp.ne.s32.totalorder %s384_s20, %s575_s30  ;;  %p580_p5 = scmp.lt.s32.totalorder %s384_s20, %s804_s3 }
  0xd9   : > { %p581_p13 = scmp.lt.s32.totalorder %s579_s7, %s575_s30 }
  0xda   : > { %p577_p3 = pnand %p576_p1, %p815_p11 }
  0xdb   : > { %p582_p6 = por %p581_p13, %p580_p5 }
  0xdc   : > { %p578_p4 = pneg %p577_p3 }
  0xde   : > { %p583_p10 = pnand %p582_p6, %p578_p4 }
  0xe0   : > { %586 = shalt.err (!%p583_p10)
}
  0xe1   : > { %474 = dma.vmem_to_hbm [thread:$0]  (%p815_p11), %s387_s11, 256, %s384_s20, %s372_s22  }
  0xe2 PF: > { %p485_p12 = scmp.ge.s32.totalorder %s625_s15, 2  ;;  %s398_s8 = sand.u32 1, %s613_s12  }
  0xe3   : > { %p816_p0 = scmp.ne.s32.totalorder %s810_s25, 0  ;;  %s399_s9 = scalar_lea.sflag [#allocation4], %s398_s8 }
  0xe5   : > { %p481_p2 = pnand %p485_p12, %p816_p0 }
  0xe7   : > { %p482_p7 = pneg %p481_p2 }
  0xe9   : > { %608 = dma.done.wait (%p482_p7), %s399_s9, 256  }
  0xea   : > { %610 = vsyncadd (%p482_p7), %s399_s9, 4294967040  ;;  %p16_p8 = scmp.ge.s32.totalorder %s677_s18, 6   ;;  %s817_s12 = smov %s617_s13 }
  0xeb   : > { %s818_s13 = smov %s621_s14  ;;  %s819_s14 = smov %s689_s21 }
  0xec   : > { %s820_s15 = smov %s677_s18  ;;  %18 = sbr.rel (!%p16_p8) target bundleno = 5 (0x5), region = 77 }
  0xf1   :  { %404 = vsyncpa [#allocation3], 1 }
  0xf2   :  { %406 = vsyncpa [#allocation3 + $0x1], 1 }
  0xf3   :  { %407 = vsyncpa [#allocation4], 1 }
  0xf4   :  { %409 = vsyncpa [#allocation4 + $0x1], 1 }

</bundles_post_ra>
